<compile_context>
chip_gen: v5e
topology: v5e:2x2
jax: 0.10.0
libtpu: 0.0.40
codegen_flags: <defaults>
</compile_context>

<pallas_src>
import jax
import jax.numpy as jnp
from jax.experimental import pallas as pl
from jax.experimental.pallas import tpu as pltpu


def _round_up(x, m):
    return ((x + m - 1) // m) * m


# ----------------------------------------------------------------------------
# Kernel
# ----------------------------------------------------------------------------
def _bottleneck_kernel(x_ref, w_ref, b_ref, lnw_ref, lnb_ref, o_ref):
    """Fused: h = x @ W + b ; out = ln_w * h + ln_b."""
    h = jnp.dot(x_ref[...], w_ref[...], preferred_element_type=jnp.float32)
    h = h + b_ref[...]
    h = lnw_ref[...] * h + lnb_ref[...]          # FakeBertLayerNorm (affine only)
    o_ref[...] = h.astype(o_ref.dtype)


# ----------------------------------------------------------------------------
# Wrapper
# ----------------------------------------------------------------------------
def bottleneck_shrink_input(hidden_states, params, *, tm=256):
    """hidden_states: [..., H] -> [..., D] with D = intra_bottleneck_size."""
    *lead, H = hidden_states.shape
    D = params["dense_w"].shape[0]

    x = hidden_states.reshape(-1, H)
    M = x.shape[0]

    # Large row tile for the MXU; clamp to (padded) problem size so small test
    # shapes don't force wasteful padding, and pad rows so M need not divide tm.
    tm = max(8, min(tm, _round_up(M, 8)))
    Mp = _round_up(M, tm)
    if Mp != M:
        x = jnp.pad(x, ((0, Mp - M), (0, 0)))

    # Pre-transpose so the kernel computes row-major x @ W.
    # TODO(synk): for production sizes, cast x / w to bfloat16 here (keep the
    # f32 accumulation in the kernel) to hit MXU native throughput.
    w = params["dense_w"].T.astype(x.dtype)                  # [H, D]
    b = params["dense_b"].reshape(1, D).astype(jnp.float32)
    lnw = params["ln_w"].reshape(1, D).astype(jnp.float32)
    lnb = params["ln_b"].reshape(1, D).astype(jnp.float32)

    # Explicit VMEM budget: double-buffered x/out tiles + resident weight/bias,
    # with headroom, capped at 48 MiB so the same config also fits v7x (64 MiB).
    itemsize = jnp.dtype(x.dtype).itemsize
    need = 2 * 2 * (tm * H + tm * D) * itemsize + (H * D + 3 * D) * 4
    vmem_limit = int(min(max(2 * need, 16 * 1024 * 1024), 48 * 1024 * 1024))

    out = pl.pallas_call(
        _bottleneck_kernel,
        out_shape=jax.ShapeDtypeStruct((Mp, D), hidden_states.dtype),
        grid_spec=pltpu.PrefetchScalarGridSpec(
            num_scalar_prefetch=0,
            grid=(Mp // tm,),
            in_specs=[
                pl.BlockSpec((tm, H), lambda i: (i, 0)),    # activations (row-tiled)
                pl.BlockSpec((H, D), lambda i: (0, 0)),     # dense weight (resident)
                pl.BlockSpec((1, D), lambda i: (0, 0)),     # dense bias
                pl.BlockSpec((1, D), lambda i: (0, 0)),     # FakeLayerNorm weight
                pl.BlockSpec((1, D), lambda i: (0, 0)),     # FakeLayerNorm bias
            ],
            out_specs=pl.BlockSpec((tm, D), lambda i: (i, 0)),
        ),
        compiler_params=pltpu.CompilerParams(
            dimension_semantics=("parallel",),   # row axis shards across TCs on v7x
            vmem_limit_bytes=vmem_limit,
        ),
    )(x, w, b, lnw, lnb)

    return out[:M].reshape(*lead, D)


# ----------------------------------------------------------------------------
# Deterministic synthetic parameters (shapes follow the module __init__)
# ----------------------------------------------------------------------------
def init_params(key, hidden, bottleneck):
    ks = jax.random.split(key, 4)
    s = 0.02
    return {
        "dense_w": jax.random.normal(ks[0], (bottleneck, hidden), jnp.float32) * s,
        "dense_b": jax.random.normal(ks[1], (bottleneck,), jnp.float32) * s,
        # FakeBertLayerNorm initializes weight=1, bias=0; perturb slightly so the
        # affine path is actually exercised by the correctness check.
        "ln_w": 1.0 + jax.random.normal(ks[2], (bottleneck,), jnp.float32) * s,
        "ln_b": jax.random.normal(ks[3], (bottleneck,), jnp.float32) * s,
    }


def _reference(hidden_states, params):
    """Pure-JAX reference matching the PyTorch forward."""
    h = hidden_states @ params["dense_w"].T + params["dense_b"]
    return params["ln_w"] * h + params["ln_b"]


if __name__ == "__main__":
    B, S, H, D = 2, 8, 32, 128       # hidden_size=32, intra_bottleneck_size=128
    key = jax.random.PRNGKey(0)
    k_x, k_p, k_x2 = jax.random.split(key, 3)

    params = init_params(k_p, H, D)

    hidden_states = jax.random.normal(k_x, (B, S, H), jnp.float32)
    out = bottleneck_shrink_input(hidden_states, params)
    out = jax.block_until_ready(out)

    ref = _reference(hidden_states, params)
    assert out.shape == (B, S, D)
    assert jnp.allclose(out, ref, atol=1e-5, rtol=1e-5)

    # Ragged row count (M = 30 not a multiple of the tile) exercises the
    # wrapper padding + tm clamping path.
    x2 = jax.random.normal(k_x2, (3, 10, H), jnp.float32)
    out2 = jax.block_until_ready(bottleneck_shrink_input(x2, params, tm=256))
    assert out2.shape == (3, 10, D)
    assert jnp.allclose(out2, _reference(x2, params), atol=1e-5, rtol=1e-5)

    print("KERNEL_OK")
</pallas_src>

<mosaic_0001>
module attributes {stable_mosaic.version = 11 : i64} {
  func.func @_bottleneck_kernel(%arg0: i32, %arg1: memref<16x32xf32, #tpu.memory_space<vmem>>, %arg2: memref<32x128xf32, #tpu.memory_space<vmem>>, %arg3: memref<1x128xf32, #tpu.memory_space<vmem>>, %arg4: memref<1x128xf32, #tpu.memory_space<vmem>>, %arg5: memref<1x128xf32, #tpu.memory_space<vmem>>, %arg6: memref<16x128xf32, #tpu.memory_space<vmem>>) attributes {dimension_semantics = [#tpu.dimension_semantics<parallel>], iteration_bounds = array<i64: 1>, scalar_prefetch = 0 : i64, scratch_operands = 0 : i64, tpu.core_type = #tpu.core_type<tc>, window_params = [{transform_indices = @transform_0, window_bounds = array<i64: 16, 32>}, {pipeline_mode = #tpu.pipeline_mode<synchronous>, transform_indices = @transform_1, window_bounds = array<i64: 32, 128>}, {pipeline_mode = #tpu.pipeline_mode<synchronous>, transform_indices = @transform_2, window_bounds = array<i64: 1, 128>}, {pipeline_mode = #tpu.pipeline_mode<synchronous>, transform_indices = @transform_3, window_bounds = array<i64: 1, 128>}, {pipeline_mode = #tpu.pipeline_mode<synchronous>, transform_indices = @transform_4, window_bounds = array<i64: 1, 128>}, {transform_indices = @transform_5, window_bounds = array<i64: 16, 128>}]} {
    %c0 = arith.constant 0 : index
    %c0_0 = arith.constant 0 : index
    %0 = vector.load %arg1[%c0, %c0_0] : memref<16x32xf32, #tpu.memory_space<vmem>>, vector<16x32xf32>
    %c0_1 = arith.constant 0 : index
    %c0_2 = arith.constant 0 : index
    %1 = vector.load %arg2[%c0_1, %c0_2] : memref<32x128xf32, #tpu.memory_space<vmem>>, vector<32x128xf32>
    %cst = arith.constant dense<0.000000e+00> : vector<16x128xf32>
    %2 = tpu.matmul %0, %1, %cst {dimension_numbers = #tpu.dot_dimension_numbers<[1], [0], [0], [1], [0, 0, 1, 1], [], []>} : vector<16x32xf32>, vector<32x128xf32>, vector<16x128xf32> -> vector<16x128xf32>
    %c0_3 = arith.constant 0 : index
    %c0_4 = arith.constant 0 : index
    %3 = vector.load %arg3[%c0_3, %c0_4] : memref<1x128xf32, #tpu.memory_space<vmem>>, vector<1x128xf32>
    %4 = vector.broadcast %3 : vector<1x128xf32> to vector<16x128xf32>
    %5 = arith.addf %2, %4 : vector<16x128xf32>
    %c0_5 = arith.constant 0 : index
    %c0_6 = arith.constant 0 : index
    %6 = vector.load %arg4[%c0_5, %c0_6] : memref<1x128xf32, #tpu.memory_space<vmem>>, vector<1x128xf32>
    %7 = vector.broadcast %6 : vector<1x128xf32> to vector<16x128xf32>
    %8 = arith.mulf %7, %5 : vector<16x128xf32>
    %c0_7 = arith.constant 0 : index
    %c0_8 = arith.constant 0 : index
    %9 = vector.load %arg5[%c0_7, %c0_8] : memref<1x128xf32, #tpu.memory_space<vmem>>, vector<1x128xf32>
    %10 = vector.broadcast %9 : vector<1x128xf32> to vector<16x128xf32>
    %11 = arith.addf %8, %10 : vector<16x128xf32>
    %c0_9 = arith.constant 0 : index
    %c0_10 = arith.constant 0 : index
    %12 = vector.load %arg6[%c0_9, %c0_10] : memref<16x128xf32, #tpu.memory_space<vmem>>, vector<16x128xf32>
    tpu.vector_store %arg6[%c0_9, %c0_10], %11 {strides = array<i32>} : memref<16x128xf32, #tpu.memory_space<vmem>>, vector<16x128xf32>,
    return
  }
  func.func @transform_0(%arg0: i32) -> (i32, i32) {
    %c0_i32 = arith.constant 0 : i32
    %c0_i32_0 = arith.constant 0 : i32
    return %arg0, %c0_i32 : i32, i32
  }
  func.func @transform_1(%arg0: i32) -> (i32, i32) {
    %c0_i32 = arith.constant 0 : i32
    %c0_i32_0 = arith.constant 0 : i32
    %c0_i32_1 = arith.constant 0 : i32
    return %c0_i32, %c0_i32_0 : i32, i32
  }
  func.func @transform_2(%arg0: i32) -> (i32, i32) {
    %c0_i32 = arith.constant 0 : i32
    %c0_i32_0 = arith.constant 0 : i32
    %c0_i32_1 = arith.constant 0 : i32
    return %c0_i32, %c0_i32_0 : i32, i32
  }
  func.func @transform_3(%arg0: i32) -> (i32, i32) {
    %c0_i32 = arith.constant 0 : i32
    %c0_i32_0 = arith.constant 0 : i32
    %c0_i32_1 = arith.constant 0 : i32
    return %c0_i32, %c0_i32_0 : i32, i32
  }
  func.func @transform_4(%arg0: i32) -> (i32, i32) {
    %c0_i32 = arith.constant 0 : i32
    %c0_i32_0 = arith.constant 0 : i32
    %c0_i32_1 = arith.constant 0 : i32
    return %c0_i32, %c0_i32_0 : i32, i32
  }
  func.func @transform_5(%arg0: i32) -> (i32, i32) {
    %c0_i32 = arith.constant 0 : i32
    %c0_i32_0 = arith.constant 0 : i32
    return %arg0, %c0_i32 : i32, i32
  }
}

</mosaic_0001>

<bundles_post_ra>
// kernel: tpu_custom_call.1
= control target key start
LH: loop header
LB: loop body
LE: loop exit
PB: predicated region body
PF: predicated region fallthrough
CT: control target
= control target key end

     0   :  { %10 = vsyncpa [#allocation3], 0  ;;  %s281_s0 = inlined_call_operand.hbm [shape: f32[16,32], index: 0, kind: input, shape index: {}]   ;;  %s282_s1 = inlined_call_operand.hbm [shape: f32[32,128], index: 1, kind: input, shape index: {}]   ;;  %s283_s2 = inlined_call_operand.vmem [shape: f32[1,128], index: 2, kind: input, shape index: {}]   ;;  %s284_s3 = inlined_call_operand.vmem [shape: f32[1,128], index: 3, kind: input, shape index: {}]   ;;  %s285_s4 = inlined_call_operand.vmem [shape: f32[1,128], index: 4, kind: input, shape index: {}]   ;;  %s286_s5 = inlined_call_operand.hbm [shape: f32[16,128], index: 5, kind: output, shape index: {}]  }
   0x1   :  { %11 = vsyncpa [#allocation6], 0 }
   0x2   :  { %12 = vsyncpa [#allocation4], 0  ;;  %s17_s20 = sshll.u32 %s281_s0, 4  ;;  %s219_s21 = smov [#allocation2]   ;;  %s18_s20 = int_to_ptr.hbm [resolvable:$true] %s17_s20 }
   0x3   :  { %s19_s22 = sshll.u32 %s219_s21, 4  ;;  %s30_s25 = sshll.u32 %s282_s1, 4  ;;  %s20_s22 = int_to_ptr.vmem [resolvable:$true] %s19_s22  ;;  %s31_s25 = int_to_ptr.hbm [resolvable:$true] %s30_s25 }
   0x4   :  { %s220_s26 = smov 128   ;;  %s221_s27 = smov 8  }
   0x5   :  { %25 = dma.hbm_to_vmem [thread:$0]  %s18_s20, 256, %s20_s22, [#allocation3], %s220_s26, %s220_s26, %s221_s27  }
   0x6   :  { %s222_s28 = smov [#allocation5]  }
   0x7   :  { %s32_s29 = sshll.u32 %s222_s28, 4  ;;  %s33_s29 = int_to_ptr.vmem [resolvable:$true] %s32_s29 }
   0x8   :  { %38 = dma.hbm_to_vmem [thread:$0]  %s31_s25, 512, %s33_s29, [#allocation6], %s220_s26, %s220_s26, %s221_s27  }
   0x9   :  { %213 = dma.done.wait [#allocation3], 256  }
   0xa   :  { %214 = vsyncadd [#allocation3], 4294967040 }
   0xb   :  { %215 = dma.done.wait [#allocation6], 512  }
   0xc   :  { %216 = vsyncadd [#allocation6], 4294966784  ;;  %v58_v0 = vld [vmem:[#allocation5 + $0x18] sm:$0xff]  ;;  %v57_v1 = vld [vmem:[#allocation5 + $0x10] sm:$0xff]  ;;  %vm63_vm0 = vcmask 261120   ;;  %s223_s9 = smov [#allocation7]  }
   0xd   :  { %82 = vmatpush.msra.mxu0 %v58_v0  ;;  %129 = vmatpush.msra.mxu1 %v58_v0  ;;  %v56_v2 = vld [vmem:[#allocation5 + $0x8] sm:$0xff]  ;;  %v55_v3 = vld [vmem:[#allocation5] sm:$0xff]  ;;  %v53_v4 = vld [vmem:[#allocation2] sm:$0xff]  ;;  %s111_s10 = sshll.u32 %s223_s9, 4  ;;  %s112_s10 = int_to_ptr.vmem [resolvable:$true] %s111_s10 }
   0xe   :  { %v54_v5 = vld [vmem:[#allocation2 + $0x8] sm:$0xff]  ;;  %v138_v6 = vld [vmem:[%s283_s2] ss:$0 sm:$0xff]  ;;  %s113_s2 = sshll.u32 %s286_s5, 4  ;;  %s114_s2 = int_to_ptr.hbm [resolvable:$true] %s113_s2 }
   0xf   :  { %83 = vmatpush.msra.mxu0 %v57_v1  ;;  %130 = vmatpush.msra.mxu1 %v57_v1  ;;  %v139_v7 = vld [vmem:[%s284_s3] ss:$0 sm:$0xff] }
  0x10   :  { %v140_v11 = vld [vmem:[%s285_s4] ss:$0 sm:$0xff] }
  0x11   :  { %84 = vmatpush.msra.mxu0 %v56_v2  ;;  %131 = vmatpush.msra.mxu1 %v56_v2 }
  0x13   :  { %85 = vmatpush.msra.mxu0 %v55_v3  ;;  %132 = vmatpush.msra.mxu1 %v55_v3 }
  0x14   :  { %127 = vmatmul.msk.f32.vlgmr.msra.gmra.mxu0 %vm63_vm0, %v53_v4  ;;  %128 = vmatmul.msk.f32.vlgmr.msra.gmra.mxu1 %vm63_vm0, %v54_v5 }
  0x91   :  { %v87_v8 = vpop.f32.mrf.mxu0  ;;  %v90_v9 = vpop.f32.mrf.mxu1 }
  0x92   :  { %v88_v10 = vadd.f32 %v138_v6, %v87_v8  ;;  %v91_v12 = vadd.f32 %v138_v6, %v90_v9 }
  0x94   :  { %v97_v13 = vmul.f32 %v139_v7, %v88_v10  ;;  %v98_v14 = vmul.f32 %v139_v7, %v91_v12 }
  0x96   :  { %v103_v15 = vadd.f32 %v140_v11, %v97_v13  ;;  %v104_v16 = vadd.f32 %v140_v11, %v98_v14 }
  0x98   :  { %105 = vst [vmem:[#allocation7] sm:$0xff] %v103_v15 }
  0x99   :  { %106 = vst [vmem:[#allocation7 + $0x8] sm:$0xff] %v104_v16 }
  0x9a   :  { %119 = dma.vmem_to_hbm [thread:$0]  %s112_s10, 256, %s114_s2, [#allocation4], %s220_s26, %s220_s26, %s221_s27  }
  0x9b   :  { %217 = dma.done.wait [#allocation4], 256  }
  0x9c   :  { %218 = vsyncadd [#allocation4], 4294967040 }
  0x9d   :  { %124 = vsyncpa [#allocation3], 1 }
  0x9e   :  { %125 = vsyncpa [#allocation6], 1 }
  0x9f   :  { %126 = vsyncpa [#allocation4], 1 }

</bundles_post_ra>
